<compile_context>
chip_gen: v7x
topology: tpu7x:2x2x1
jax: 0.10.0
libtpu: 0.0.40
codegen_flags: <defaults>
</compile_context>

<pallas_src>
import functools

import jax
import jax.numpy as jnp
from jax import lax
from jax.experimental import pallas as pl
from jax.experimental.pallas import tpu as pltpu

LANE = 128            # TPU lane width; every feature dim is padded to this
EDGE_TILE_MAX = 512   # edge rows per block (v7x 64 MiB VMEM safe)
NODE_TILE_MAX = 256   # node rows per block
VMEM_LIMIT = 32 * 1024 * 1024


def _round_up(v, m):
    return (v + m - 1) // m * m


def _pad2(a, rows, cols):
    return jnp.pad(a, ((0, rows - a.shape[0]), (0, cols - a.shape[1])))


# ------------------------------ Pallas kernels -------------------------------

def _edge_kernel(ein_ref, w1_ref, b1_ref, w2_ref, b2_ref, out_ref):
    # e_new = ReLU([x_src ; x_dst ; e_attr] @ W1 + b1) @ W2 + b2
    # The concat input is pre-built lane-padded bf16, so layer 1 is ONE deep
    # (TE, 3*128) @ (3*128, 128) MXU matmul instead of three shallow K=8 ones.
    h = (jnp.dot(ein_ref[...], w1_ref[...], preferred_element_type=jnp.float32)
         + b1_ref[...])
    h = jnp.maximum(h, 0.0)
    out_ref[...] = (jnp.dot(h.astype(jnp.bfloat16), w2_ref[...],
                            preferred_element_type=jnp.float32)
                    + b2_ref[...]).astype(out_ref.dtype)


def _node_kernel(dst_ref, e_ref, x_ref, invdeg_ref,
                 v1x_ref, v1e_ref, c1_ref, v2_ref, c2_ref,
                 out_ref, acc_ref):
    # Grid = (node tiles "parallel", edge tiles "arbitrary" reduction).
    # scatter_mean(e_new, dst): one-hot built on the fly (never in HBM),
    # segment-sum accumulated in VMEM f32 scratch; MLP finalized at last E tile.
    tn = x_ref.shape[0]
    te = dst_ref.shape[1]
    n = pl.program_id(0)
    e = pl.program_id(1)

    @pl.when(e == 0)
    def _():
        acc_ref[...] = jnp.zeros_like(acc_ref)

    node_ids = lax.broadcasted_iota(jnp.int32, (tn, te), 0) + n * tn
    onehot = (node_ids == dst_ref[...]).astype(jnp.bfloat16)
    acc_ref[...] += jnp.dot(onehot, e_ref[...].astype(jnp.bfloat16),
                            preferred_element_type=jnp.float32)

    @pl.when(e == pl.num_programs(1) - 1)
    def _():
        agg = acc_ref[...] * invdeg_ref[...]        # mean; 1/deg precomputed (f32)
        h = (jnp.dot(x_ref[...], v1x_ref[...], preferred_element_type=jnp.float32)
             + jnp.dot(agg.astype(jnp.bfloat16), v1e_ref[...],
                       preferred_element_type=jnp.float32)
             + c1_ref[...])
        h = jnp.maximum(h, 0.0)
        out_ref[...] = (jnp.dot(h.astype(jnp.bfloat16), v2_ref[...],
                                preferred_element_type=jnp.float32)
                        + c2_ref[...]).astype(out_ref.dtype)


# ---------------------------- pallas_call wrappers ----------------------------

def _edge_pallas(e_in, w1, b1, w2, b2, te):
    e_pad, k = e_in.shape
    return pl.pallas_call(
        _edge_kernel,
        out_shape=jax.ShapeDtypeStruct((e_pad, LANE), jnp.float32),
        grid_spec=pltpu.PrefetchScalarGridSpec(
            num_scalar_prefetch=0,
            grid=(e_pad // te,),
            in_specs=[
                pl.BlockSpec((te, k), lambda i: (i, 0)),          # concat input
                pl.BlockSpec((k, LANE), lambda i: (0, 0)),        # W1 (resident)
                pl.BlockSpec((1, LANE), lambda i: (0, 0)),        # b1
                pl.BlockSpec((LANE, LANE), lambda i: (0, 0)),     # W2
                pl.BlockSpec((1, LANE), lambda i: (0, 0)),        # b2
            ],
            out_specs=pl.BlockSpec((te, LANE), lambda i: (i, 0)),
        ),
        compiler_params=pltpu.CompilerParams(
            dimension_semantics=("parallel",),
            vmem_limit_bytes=VMEM_LIMIT),
    )(e_in, w1, b1, w2, b2)


def _node_pallas(dst_row, e_new, x_p, inv_deg, v1x, v1e, c1, v2, c2, tn, te):
    n_pad = x_p.shape[0]
    e_pad = e_new.shape[0]
    return pl.pallas_call(
        _node_kernel,
        out_shape=jax.ShapeDtypeStruct((n_pad, LANE), jnp.float32),
        grid_spec=pltpu.PrefetchScalarGridSpec(
            num_scalar_prefetch=0,
            grid=(n_pad // tn, e_pad // te),
            in_specs=[
                pl.BlockSpec((1, te), lambda n, e: (0, e)),       # dst ids
                pl.BlockSpec((te, LANE), lambda n, e: (e, 0)),    # e_new tile
                pl.BlockSpec((tn, LANE), lambda n, e: (n, 0)),    # x tile
                pl.BlockSpec((tn, 1), lambda n, e: (n, 0)),       # 1/deg tile
                pl.BlockSpec((LANE, LANE), lambda n, e: (0, 0)),  # V1x
                pl.BlockSpec((LANE, LANE), lambda n, e: (0, 0)),  # V1e
                pl.BlockSpec((1, LANE), lambda n, e: (0, 0)),     # c1
                pl.BlockSpec((LANE, LANE), lambda n, e: (0, 0)),  # V2
                pl.BlockSpec((1, LANE), lambda n, e: (0, 0)),     # c2
            ],
            out_specs=pl.BlockSpec((tn, LANE), lambda n, e: (n, 0)),
            scratch_shapes=[pltpu.VMEM((tn, LANE), jnp.float32)],
        ),
        compiler_params=pltpu.CompilerParams(
            dimension_semantics=("parallel", "arbitrary"),
            vmem_limit_bytes=VMEM_LIMIT),
    )(dst_row, e_new, x_p, inv_deg, v1x, v1e, c1, v2, c2)


# ------------------------------- MetaLayer -----------------------------------

def _prep_kernel_params(p):
    """Pad all weights/biases to 128 lanes, concatenate W1 host-side, cast
    matmul operands to bf16 (biases stay f32: elementwise is f32 on all gens)."""
    bf = jnp.bfloat16
    w1 = jnp.concatenate([_pad2(p["w1a"], LANE, LANE),
                          _pad2(p["w1b"], LANE, LANE),
                          _pad2(p["w1c"], LANE, LANE)], axis=0).astype(bf)
    return dict(
        w1=w1,
        b1=_pad2(p["b1"], 1, LANE).astype(jnp.float32),
        w2=_pad2(p["w2"], LANE, LANE).astype(bf),
        b2=_pad2(p["b2"], 1, LANE).astype(jnp.float32),
        v1x=_pad2(p["v1a"], LANE, LANE).astype(bf),
        v1e=_pad2(p["v1b"], LANE, LANE).astype(bf),
        c1=_pad2(p["c1"], 1, LANE).astype(jnp.float32),
        v2=_pad2(p["v2"], LANE, LANE).astype(bf),
        c2=_pad2(p["c2"], 1, LANE).astype(jnp.float32),
    )


@functools.partial(jax.jit, static_argnames=("num_nodes",))
def meta_layer_forward(x, edge_index, edge_attr, params, *, num_nodes=None,
                       f=None, u=None, batch=None):
    """MetaLayer.forward: returns (x_new, edge_attr_new)."""
    del f, u, batch                     # accepted but unused by these models
    n_nodes, f_x = x.shape
    n_edges, f_e = edge_attr.shape
    if num_nodes is not None:
        assert num_nodes == n_nodes
    h_dim = params["w1a"].shape[1]
    f_e_out = params["w2"].shape[1]
    f_x_out = params["v2"].shape[1]
    assert max(f_x, f_e, h_dim, f_e_out, f_x_out) <= LANE
    # TODO(synk): tile the feature (K/N) dims as well for feature dims > 128.

    src = edge_index[0].astype(jnp.int32)
    dst = edge_index[1].astype(jnp.int32)

    # Tiling (footprint ~2 MiB incl. double buffering -> safe on v7x 64 MiB VMEM)
    te = min(EDGE_TILE_MAX, _round_up(n_edges, LANE))
    e_pad = _round_up(n_edges, te)
    tn = min(NODE_TILE_MAX, _round_up(n_nodes, 8))
    n_pad = _round_up(n_nodes, tn)

    kp = _prep_kernel_params(params)

    # ---- glue: O(N)+O(E) only, nothing O(N*E) is ever materialized ----------
    x_p = _pad2(x, n_pad, LANE).astype(jnp.bfloat16)
    ea_p = _pad2(edge_attr, n_edges, LANE).astype(jnp.bfloat16)
    # TODO(synk): move the x[src]/x[dst] row gather into the edge kernel
    # (SMEM indices + in-kernel dynamic-slice gather) to drop this HBM round trip.
    e_in = jnp.concatenate(
        [jnp.take(x_p, src, axis=0), jnp.take(x_p, dst, axis=0), ea_p], axis=1)
    e_in = jnp.pad(e_in, ((0, e_pad - n_edges), (0, 0)))

    dst_row = jnp.concatenate(
        [dst, jnp.full((e_pad - n_edges,), -1, jnp.int32)]).reshape(1, e_pad)
    deg = jnp.zeros((n_pad,), jnp.float32).at[dst].add(1.0)
    inv_deg = (1.0 / jnp.maximum(deg, 1.0)).reshape(n_pad, 1)

    # edge_attr_new = edge_model(x[src], x[dst], edge_attr, u, batch[src])
    e_new_full = _edge_pallas(e_in, kp["w1"], kp["b1"], kp["w2"], kp["b2"], te)

    # x_new = node_model(x, edge_index, edge_attr_new, f, u, batch)
    x_new_full = _node_pallas(dst_row, e_new_full, x_p, inv_deg,
                              kp["v1x"], kp["v1e"], kp["c1"], kp["v2"], kp["c2"],
                              tn, te)

    x_new = x_new_full[:n_nodes, :f_x_out].astype(x.dtype)
    e_new = e_new_full[:n_edges, :f_e_out].astype(edge_attr.dtype)
    return x_new, e_new


# ----------------------------- pure-JAX reference -----------------------------

def meta_layer_reference(x, edge_index, edge_attr, params, num_nodes):
    src, dst = edge_index[0], edge_index[1]
    h = jnp.maximum(x[src] @ params["w1a"] + x[dst] @ params["w1b"]
                    + edge_attr @ params["w1c"] + params["b1"], 0.0)
    e_new = h @ params["w2"] + params["b2"]

    agg = jnp.zeros((num_nodes, e_new.shape[1]), jnp.float32).at[dst].add(e_new)
    deg = jnp.zeros((num_nodes,), jnp.float32).at[dst].add(1.0)
    agg = agg / jnp.maximum(deg, 1.0)[:, None]

    h2 = jnp.maximum(x @ params["v1a"] + agg @ params["v1b"] + params["c1"], 0.0)
    x_new = h2 @ params["v2"] + params["c2"]
    return x_new, e_new


# ----------------------------------- main --------------------------------------

def _make_params(key, f_x, f_e, h, f_e_out, f_x_out):
    ks = jax.random.split(key, 10)
    s = 0.1
    return {
        "w1a": s * jax.random.normal(ks[0], (f_x, h), jnp.float32),
        "w1b": s * jax.random.normal(ks[1], (f_x, h), jnp.float32),
        "w1c": s * jax.random.normal(ks[2], (f_e, h), jnp.float32),
        "b1":  s * jax.random.normal(ks[3], (1, h), jnp.float32),
        "w2":  s * jax.random.normal(ks[4], (h, f_e_out), jnp.float32),
        "b2":  s * jax.random.normal(ks[5], (1, f_e_out), jnp.float32),
        "v1a": s * jax.random.normal(ks[6], (f_x, h), jnp.float32),
        "v1b": s * jax.random.normal(ks[7], (f_e_out, h), jnp.float32),
        "c1":  s * jax.random.normal(ks[8], (1, h), jnp.float32),
        "v2":  s * jax.random.normal(ks[9], (h, f_x_out), jnp.float32),
        "c2":  jnp.zeros((1, f_x_out), jnp.float32),
    }


if __name__ == "__main__":
    N, E = 16, 32
    F_x, F_e = 8, 8
    H = 32
    F_e_out, F_x_out = 8, 8

    key = jax.random.PRNGKey(0)
    k_x, k_e, k_idx, k_p = jax.random.split(key, 4)

    x = jax.random.normal(k_x, (N, F_x), jnp.float32)
    edge_attr = jax.random.normal(k_e, (E, F_e), jnp.float32)
    edge_index = jax.random.randint(k_idx, (2, E), 0, N, dtype=jnp.int32)
    params = _make_params(k_p, F_x, F_e, H, F_e_out, F_x_out)

    x_new, e_new = meta_layer_forward(x, edge_index, edge_attr, params,
                                      num_nodes=N)
    jax.block_until_ready((x_new, e_new))

    x_ref, e_ref = meta_layer_reference(x, edge_index, edge_attr, params, N)
    # bf16 MXU operands (f32 accumulation) -> compare with bf16-level tolerance.
    assert jnp.allclose(e_new, e_ref, rtol=5e-2, atol=5e-2), "edge mismatch"
    assert jnp.allclose(x_new, x_ref, rtol=5e-2, atol=5e-2), "node mismatch"

    print("KERNEL_OK")
</pallas_src>

<mosaic_0001>
module attributes {stable_mosaic.version = 11 : i64} {
  func.func private @main(%arg0: i32) attributes {dimension_semantics = [#tpu.dimension_semantics<core_parallel>], iteration_bounds = array<i64: 2>, tpu.core_type = #tpu.core_type<sc_scalar_subcore>, window_params = []} {
    return
  }
}

module attributes {stable_mosaic.version = 11 : i64} {
  func.func private @main(%arg0: i32) attributes {dimension_semantics = [#tpu.dimension_semantics<core_parallel>], iteration_bounds = array<i64: 2>, tpu.core_type = #tpu.core_type<sc_scalar_subcore>, window_params = []} {
    return
  }
}

module attributes {stable_mosaic.version = 11 : i64} {
  func.func @_edge_kernel(%arg0: i32, %arg1: memref<128x384xbf16, #tpu.memory_space<vmem>>, %arg2: memref<384x128xbf16, #tpu.memory_space<vmem>>, %arg3: memref<1x128xf32, #tpu.memory_space<vmem>>, %arg4: memref<128x128xbf16, #tpu.memory_space<vmem>>, %arg5: memref<1x128xf32, #tpu.memory_space<vmem>>, %arg6: memref<128x128xf32, #tpu.memory_space<vmem>>) attributes {dimension_semantics = [#tpu.dimension_semantics<parallel>], iteration_bounds = array<i64: 1>, scalar_prefetch = 0 : i64, scratch_operands = 0 : i64, tpu.core_type = #tpu.core_type<tc>, window_params = [{transform_indices = @transform_0, window_bounds = array<i64: 128, 384>}, {pipeline_mode = #tpu.pipeline_mode<synchronous>, transform_indices = @transform_1, window_bounds = array<i64: 384, 128>}, {pipeline_mode = #tpu.pipeline_mode<synchronous>, transform_indices = @transform_2, window_bounds = array<i64: 1, 128>}, {pipeline_mode = #tpu.pipeline_mode<synchronous>, transform_indices = @transform_3, window_bounds = array<i64: 128, 128>}, {pipeline_mode = #tpu.pipeline_mode<synchronous>, transform_indices = @transform_4, window_bounds = array<i64: 1, 128>}, {transform_indices = @transform_5, window_bounds = array<i64: 128, 128>}]} {
    %c0 = arith.constant 0 : index
    %c0_0 = arith.constant 0 : index
    %0 = vector.load %arg1[%c0, %c0_0] : memref<128x384xbf16, #tpu.memory_space<vmem>>, vector<128x384xbf16>
    %c0_1 = arith.constant 0 : index
    %c0_2 = arith.constant 0 : index
    %1 = vector.load %arg2[%c0_1, %c0_2] : memref<384x128xbf16, #tpu.memory_space<vmem>>, vector<384x128xbf16>
    %cst = arith.constant dense<0.000000e+00> : vector<128x128xf32>
    %2 = tpu.matmul %0, %1, %cst {dimension_numbers = #tpu.dot_dimension_numbers<[1], [0], [0], [1], [0, 0, 1, 1], [], []>} : vector<128x384xbf16>, vector<384x128xbf16>, vector<128x128xf32> -> vector<128x128xf32>
    %c0_3 = arith.constant 0 : index
    %c0_4 = arith.constant 0 : index
    %3 = vector.load %arg3[%c0_3, %c0_4] : memref<1x128xf32, #tpu.memory_space<vmem>>, vector<1x128xf32>
    %4 = vector.broadcast %3 : vector<1x128xf32> to vector<128x128xf32>
    %5 = arith.addf %2, %4 : vector<128x128xf32>
    %cst_5 = arith.constant 0.000000e+00 : f32
    %6 = vector.broadcast %cst_5 : f32 to vector<128x128xf32>
    %7 = arith.maximumf %5, %6 : vector<128x128xf32>
    %8 = arith.truncf %7 : vector<128x128xf32> to vector<128x128xbf16>
    %c0_6 = arith.constant 0 : index
    %c0_7 = arith.constant 0 : index
    %9 = vector.load %arg4[%c0_6, %c0_7] : memref<128x128xbf16, #tpu.memory_space<vmem>>, vector<128x128xbf16>
    %cst_8 = arith.constant dense<0.000000e+00> : vector<128x128xf32>
    %10 = tpu.matmul %8, %9, %cst_8 {dimension_numbers = #tpu.dot_dimension_numbers<[1], [0], [0], [1], [0, 0, 1, 1], [], []>} : vector<128x128xbf16>, vector<128x128xbf16>, vector<128x128xf32> -> vector<128x128xf32>
    %c0_9 = arith.constant 0 : index
    %c0_10 = arith.constant 0 : index
    %11 = vector.load %arg5[%c0_9, %c0_10] : memref<1x128xf32, #tpu.memory_space<vmem>>, vector<1x128xf32>
    %12 = vector.broadcast %11 : vector<1x128xf32> to vector<128x128xf32>
    %13 = arith.addf %10, %12 : vector<128x128xf32>
    %c0_11 = arith.constant 0 : index
    %c0_12 = arith.constant 0 : index
    %14 = vector.load %arg6[%c0_11, %c0_12] : memref<128x128xf32, #tpu.memory_space<vmem>>, vector<128x128xf32>
    tpu.vector_store %arg6[%c0_11, %c0_12], %13 {strides = array<i32>} : memref<128x128xf32, #tpu.memory_space<vmem>>, vector<128x128xf32>,
    return
  }
  func.func @transform_0(%arg0: i32) -> (i32, i32) {
    %c0_i32 = arith.constant 0 : i32
    %c0_i32_0 = arith.constant 0 : i32
    return %arg0, %c0_i32 : i32, i32
  }
  func.func @transform_1(%arg0: i32) -> (i32, i32) {
    %c0_i32 = arith.constant 0 : i32
    %c0_i32_0 = arith.constant 0 : i32
    %c0_i32_1 = arith.constant 0 : i32
    return %c0_i32, %c0_i32_0 : i32, i32
  }
  func.func @transform_2(%arg0: i32) -> (i32, i32) {
    %c0_i32 = arith.constant 0 : i32
    %c0_i32_0 = arith.constant 0 : i32
    %c0_i32_1 = arith.constant 0 : i32
    return %c0_i32, %c0_i32_0 : i32, i32
  }
  func.func @transform_3(%arg0: i32) -> (i32, i32) {
    %c0_i32 = arith.constant 0 : i32
    %c0_i32_0 = arith.constant 0 : i32
    %c0_i32_1 = arith.constant 0 : i32
    return %c0_i32, %c0_i32_0 : i32, i32
  }
  func.func @transform_4(%arg0: i32) -> (i32, i32) {
    %c0_i32 = arith.constant 0 : i32
    %c0_i32_0 = arith.constant 0 : i32
    %c0_i32_1 = arith.constant 0 : i32
    return %c0_i32, %c0_i32_0 : i32, i32
  }
  func.func @transform_5(%arg0: i32) -> (i32, i32) {
    %c0_i32 = arith.constant 0 : i32
    %c0_i32_0 = arith.constant 0 : i32
    return %arg0, %c0_i32 : i32, i32
  }
}

module attributes {stable_mosaic.version = 11 : i64} {
  func.func @_node_kernel(%arg0: i32, %arg1: i32, %arg2: memref<1x128xi32, #tpu.memory_space<vmem>>, %arg3: memref<128x128xf32, #tpu.memory_space<vmem>>, %arg4: memref<16x128xbf16, #tpu.memory_space<vmem>>, %arg5: memref<16x1xf32, #tpu.memory_space<vmem>>, %arg6: memref<128x128xbf16, #tpu.memory_space<vmem>>, %arg7: memref<128x128xbf16, #tpu.memory_space<vmem>>, %arg8: memref<1x128xf32, #tpu.memory_space<vmem>>, %arg9: memref<128x128xbf16, #tpu.memory_space<vmem>>, %arg10: memref<1x128xf32, #tpu.memory_space<vmem>>, %arg11: memref<16x128xf32, #tpu.memory_space<vmem>>, %arg12: memref<16x128xf32, #tpu.memory_space<vmem>>) attributes {dimension_semantics = [#tpu.dimension_semantics<parallel>, #tpu.dimension_semantics<arbitrary>], iteration_bounds = array<i64: 1, 1>, scalar_prefetch = 0 : i64, scratch_operands = 1 : i64, tpu.core_type = #tpu.core_type<tc>, window_params = [{transform_indices = @transform_0, window_bounds = array<i64: 1, 128>}, {transform_indices = @transform_1, window_bounds = array<i64: 128, 128>}, {transform_indices = @transform_2, window_bounds = array<i64: 16, 128>}, {transform_indices = @transform_3, window_bounds = array<i64: 16, 1>}, {pipeline_mode = #tpu.pipeline_mode<synchronous>, transform_indices = @transform_4, window_bounds = array<i64: 128, 128>}, {pipeline_mode = #tpu.pipeline_mode<synchronous>, transform_indices = @transform_5, window_bounds = array<i64: 128, 128>}, {pipeline_mode = #tpu.pipeline_mode<synchronous>, transform_indices = @transform_6, window_bounds = array<i64: 1, 128>}, {pipeline_mode = #tpu.pipeline_mode<synchronous>, transform_indices = @transform_7, window_bounds = array<i64: 128, 128>}, {pipeline_mode = #tpu.pipeline_mode<synchronous>, transform_indices = @transform_8, window_bounds = array<i64: 1, 128>}, {transform_indices = @transform_9, window_bounds = array<i64: 16, 128>}]} {
    %c0_i32 = arith.constant 0 : i32
    %0 = arith.cmpi eq, %arg1, %c0_i32 : i32
    %1 = arith.extui %0 : i1 to i32
    %c0_i32_0 = arith.constant 0 : i32
    %2 = arith.cmpi ne, %1, %c0_i32_0 : i32
    scf.if %2 {
      %cst_10 = arith.constant 0.000000e+00 : f32
      %22 = vector.broadcast %cst_10 : f32 to vector<16x128xf32>
      %c0_11 = arith.constant 0 : index
      %c0_12 = arith.constant 0 : index
      %23 = vector.load %arg12[%c0_11, %c0_12] : memref<16x128xf32, #tpu.memory_space<vmem>>, vector<16x128xf32>
      tpu.vector_store %arg12[%c0_11, %c0_12], %22 {strides = array<i32>} : memref<16x128xf32, #tpu.memory_space<vmem>>, vector<16x128xf32>,
    } else {
    }
    %3 = tpu.iota {dimensions = array<i32: 0>} : vector<16x128xi32>
    %c16_i32 = arith.constant 16 : i32
    %4 = arith.muli %arg0, %c16_i32 : i32
    %5 = vector.broadcast %4 : i32 to vector<16x128xi32>
    %6 = arith.addi %3, %5 : vector<16x128xi32>
    %c0 = arith.constant 0 : index
    %c0_1 = arith.constant 0 : index
    %7 = vector.load %arg2[%c0, %c0_1] : memref<1x128xi32, #tpu.memory_space<vmem>>, vector<1x128xi32>
    %8 = vector.broadcast %7 : vector<1x128xi32> to vector<16x128xi32>
    %9 = arith.cmpi eq, %6, %8 : vector<16x128xi32>
    %10 = arith.extui %9 : vector<16x128xi1> to vector<16x128xi32>
    %11 = arith.sitofp %10 : vector<16x128xi32> to vector<16x128xf32>
    %12 = arith.truncf %11 : vector<16x128xf32> to vector<16x128xbf16>
    %c0_2 = arith.constant 0 : index
    %c0_3 = arith.constant 0 : index
    %13 = vector.load %arg12[%c0_2, %c0_3] : memref<16x128xf32, #tpu.memory_space<vmem>>, vector<16x128xf32>
    %c0_4 = arith.constant 0 : index
    %c0_5 = arith.constant 0 : index
    %14 = vector.load %arg3[%c0_4, %c0_5] : memref<128x128xf32, #tpu.memory_space<vmem>>, vector<128x128xf32>
    %15 = arith.truncf %14 : vector<128x128xf32> to vector<128x128xbf16>
    %cst = arith.constant dense<0.000000e+00> : vector<16x128xf32>
    %16 = tpu.matmul %12, %15, %cst {dimension_numbers = #tpu.dot_dimension_numbers<[1], [0], [0], [1], [0, 0, 1, 1], [], []>} : vector<16x128xbf16>, vector<128x128xbf16>, vector<16x128xf32> -> vector<16x128xf32>
    %17 = arith.addf %13, %16 : vector<16x128xf32>
    %c0_6 = arith.constant 0 : index
    %c0_7 = arith.constant 0 : index
    %18 = vector.load %arg12[%c0_6, %c0_7] : memref<16x128xf32, #tpu.memory_space<vmem>>, vector<16x128xf32>
    tpu.vector_store %arg12[%c0_6, %c0_7], %17 {strides = array<i32>} : memref<16x128xf32, #tpu.memory_space<vmem>>, vector<16x128xf32>,
    %c0_i32_8 = arith.constant 0 : i32
    %19 = arith.cmpi eq, %arg1, %c0_i32_8 : i32
    %20 = arith.extui %19 : i1 to i32
    %c0_i32_9 = arith.constant 0 : i32
    %21 = arith.cmpi ne, %20, %c0_i32_9 : i32
    scf.if %21 {
      %c0_10 = arith.constant 0 : index
      %c0_11 = arith.constant 0 : index
      %22 = vector.load %arg12[%c0_10, %c0_11] : memref<16x128xf32, #tpu.memory_space<vmem>>, vector<16x128xf32>
      %c0_12 = arith.constant 0 : index
      %c0_13 = arith.constant 0 : index
      %23 = vector.load %arg5[%c0_12, %c0_13] : memref<16x1xf32, #tpu.memory_space<vmem>>, vector<16x1xf32>
      %24 = vector.broadcast %23 : vector<16x1xf32> to vector<16x128xf32>
      %25 = arith.mulf %22, %24 : vector<16x128xf32>
      %c0_14 = arith.constant 0 : index
      %c0_15 = arith.constant 0 : index
      %26 = vector.load %arg4[%c0_14, %c0_15] : memref<16x128xbf16, #tpu.memory_space<vmem>>, vector<16x128xbf16>
      %c0_16 = arith.constant 0 : index
      %c0_17 = arith.constant 0 : index
      %27 = vector.load %arg6[%c0_16, %c0_17] : memref<128x128xbf16, #tpu.memory_space<vmem>>, vector<128x128xbf16>
      %cst_18 = arith.constant dense<0.000000e+00> : vector<16x128xf32>
      %28 = tpu.matmul %26, %27, %cst_18 {dimension_numbers = #tpu.dot_dimension_numbers<[1], [0], [0], [1], [0, 0, 1, 1], [], []>} : vector<16x128xbf16>, vector<128x128xbf16>, vector<16x128xf32> -> vector<16x128xf32>
      %29 = arith.truncf %25 : vector<16x128xf32> to vector<16x128xbf16>
      %c0_19 = arith.constant 0 : index
      %c0_20 = arith.constant 0 : index
      %30 = vector.load %arg7[%c0_19, %c0_20] : memref<128x128xbf16, #tpu.memory_space<vmem>>, vector<128x128xbf16>
      %cst_21 = arith.constant dense<0.000000e+00> : vector<16x128xf32>
      %31 = tpu.matmul %29, %30, %cst_21 {dimension_numbers = #tpu.dot_dimension_numbers<[1], [0], [0], [1], [0, 0, 1, 1], [], []>} : vector<16x128xbf16>, vector<128x128xbf16>, vector<16x128xf32> -> vector<16x128xf32>
      %32 = arith.addf %28, %31 : vector<16x128xf32>
      %c0_22 = arith.constant 0 : index
      %c0_23 = arith.constant 0 : index
      %33 = vector.load %arg8[%c0_22, %c0_23] : memref<1x128xf32, #tpu.memory_space<vmem>>, vector<1x128xf32>
      %34 = vector.broadcast %33 : vector<1x128xf32> to vector<16x128xf32>
      %35 = arith.addf %32, %34 : vector<16x128xf32>
      %cst_24 = arith.constant 0.000000e+00 : f32
      %36 = vector.broadcast %cst_24 : f32 to vector<16x128xf32>
      %37 = arith.maximumf %35, %36 : vector<16x128xf32>
      %38 = arith.truncf %37 : vector<16x128xf32> to vector<16x128xbf16>
      %c0_25 = arith.constant 0 : index
      %c0_26 = arith.constant 0 : index
      %39 = vector.load %arg9[%c0_25, %c0_26] : memref<128x128xbf16, #tpu.memory_space<vmem>>, vector<128x128xbf16>
      %cst_27 = arith.constant dense<0.000000e+00> : vector<16x128xf32>
      %40 = tpu.matmul %38, %39, %cst_27 {dimension_numbers = #tpu.dot_dimension_numbers<[1], [0], [0], [1], [0, 0, 1, 1], [], []>} : vector<16x128xbf16>, vector<128x128xbf16>, vector<16x128xf32> -> vector<16x128xf32>
      %c0_28 = arith.constant 0 : index
      %c0_29 = arith.constant 0 : index
      %41 = vector.load %arg10[%c0_28, %c0_29] : memref<1x128xf32, #tpu.memory_space<vmem>>, vector<1x128xf32>
      %42 = vector.broadcast %41 : vector<1x128xf32> to vector<16x128xf32>
      %43 = arith.addf %40, %42 : vector<16x128xf32>
      %c0_30 = arith.constant 0 : index
      %c0_31 = arith.constant 0 : index
      %44 = vector.load %arg11[%c0_30, %c0_31] : memref<16x128xf32, #tpu.memory_space<vmem>>, vector<16x128xf32>
      tpu.vector_store %arg11[%c0_30, %c0_31], %43 {strides = array<i32>} : memref<16x128xf32, #tpu.memory_space<vmem>>, vector<16x128xf32>,
    } else {
    }
    return
  }
  func.func @transform_0(%arg0: i32, %arg1: i32) -> (i32, i32) {
    %c0_i32 = arith.constant 0 : i32
    %c0_i32_0 = arith.constant 0 : i32
    return %c0_i32, %arg1 : i32, i32
  }
  func.func @transform_1(%arg0: i32, %arg1: i32) -> (i32, i32) {
    %c0_i32 = arith.constant 0 : i32
    %c0_i32_0 = arith.constant 0 : i32
    return %arg1, %c0_i32 : i32, i32
  }
  func.func @transform_2(%arg0: i32, %arg1: i32) -> (i32, i32) {
    %c0_i32 = arith.constant 0 : i32
    %c0_i32_0 = arith.constant 0 : i32
    return %arg0, %c0_i32 : i32, i32
  }
  func.func @transform_3(%arg0: i32, %arg1: i32) -> (i32, i32) {
    %c0_i32 = arith.constant 0 : i32
    %c0_i32_0 = arith.constant 0 : i32
    return %arg0, %c0_i32 : i32, i32
  }
  func.func @transform_4(%arg0: i32, %arg1: i32) -> (i32, i32) {
    %c0_i32 = arith.constant 0 : i32
    %c0_i32_0 = arith.constant 0 : i32
    %c0_i32_1 = arith.constant 0 : i32
    return %c0_i32, %c0_i32_0 : i32, i32
  }
  func.func @transform_5(%arg0: i32, %arg1: i32) -> (i32, i32) {
    %c0_i32 = arith.constant 0 : i32
    %c0_i32_0 = arith.constant 0 : i32
    %c0_i32_1 = arith.constant 0 : i32
    return %c0_i32, %c0_i32_0 : i32, i32
  }
  func.func @transform_6(%arg0: i32, %arg1: i32) -> (i32, i32) {
    %c0_i32 = arith.constant 0 : i32
    %c0_i32_0 = arith.constant 0 : i32
    %c0_i32_1 = arith.constant 0 : i32
    return %c0_i32, %c0_i32_0 : i32, i32
  }
  func.func @transform_7(%arg0: i32, %arg1: i32) -> (i32, i32) {
    %c0_i32 = arith.constant 0 : i32
    %c0_i32_0 = arith.constant 0 : i32
    %c0_i32_1 = arith.constant 0 : i32
    return %c0_i32, %c0_i32_0 : i32, i32
  }
  func.func @transform_8(%arg0: i32, %arg1: i32) -> (i32, i32) {
    %c0_i32 = arith.constant 0 : i32
    %c0_i32_0 = arith.constant 0 : i32
    %c0_i32_1 = arith.constant 0 : i32
    return %c0_i32, %c0_i32_0 : i32, i32
  }
  func.func @transform_9(%arg0: i32, %arg1: i32) -> (i32, i32) {
    %c0_i32 = arith.constant 0 : i32
    %c0_i32_0 = arith.constant 0 : i32
    return %arg0, %c0_i32 : i32, i32
  }
}

</mosaic_0001>

<bundles_post_ra>
// kernel: meta_layer_forward.3
= control target key start
LH: loop header
LB: loop body
LE: loop exit
PB: predicated region body
PF: predicated region fallthrough
CT: control target
= control target key end

     0   :  { %v675_v0 = vmov 0.0   ;;  %vm676_vm0 = vmmov 0   ;;  %v677_v6 = vmov 0   ;;  %v39_v23 = vlaneseq  ;;  %s913_s1 = inlined_call_operand.vmem [shape: f32[128,128], index: 1, kind: input, shape index: {}]   ;;  %s914_s3 = inlined_call_operand.vmem [shape: f32[16,1], index: 3, kind: input, shape index: {}]   ;;  %s915_s4 = inlined_call_operand.vmem [shape: bf16[128,128], index: 4, kind: input, shape index: {}]   ;;  %s916_s5 = inlined_call_operand.vmem [shape: bf16[128,128], index: 5, kind: input, shape index: {}]   ;;  %s917_s0 = inlined_call_operand.vmem [shape: s32[1,128], index: 0, kind: input, shape index: {}]   ;;  %s918_s2 = inlined_call_operand.vmem [shape: bf16[16,128], index: 2, kind: input, shape index: {}]   ;;  %s919_s7 = inlined_call_operand.vmem [shape: bf16[128,128], index: 7, kind: input, shape index: {}]   ;;  %s920_s6 = inlined_call_operand.vmem [shape: f32[1,128], index: 6, kind: input, shape index: {}]   ;;  %s921_s8 = inlined_call_operand.vmem [shape: f32[1,128], index: 8, kind: input, shape index: {}]   ;;  %s922_s9 = inlined_call_operand.vmem [shape: f32[16,128], index: 9, kind: output, shape index: {}]  }
   0x1   :  { %565 = vmatprep.subr.bf16.mxu0 %v675_v0  ;;  %v60_v1 = vld [vmem:[%s913_s1] sm:$0xff]  ;;  %v61_v2 = vld [vmem:[%s913_s1 + $0x8] sm:$0xff]  ;;  %v62_v3 = vld [vmem:[%s913_s1 + $0x10] sm:$0xff]  ;;  %581 = vmatprep.mubr.msk.bf16.mxu0 %vm676_vm0, %v675_v0  ;;  %v678_v39 = vmov 1.0|1.0  }
   0x2   :  { %v76_v4 = vpack.c.bf16 %v61_v2, %v60_v1  ;;  %v63_v5 = vld [vmem:[%s913_s1 + $0x18] sm:$0xff]  ;;  %649 = vset.pattern.permute.xlu0 %v677_v6  ;;  %585 = vmatprep.subr.bf16.mxu1 %v675_v0  ;;  %v64_v8 = vld [vmem:[%s913_s1 + $0x20] sm:$0xff]  ;;  %v65_v9 = vld [vmem:[%s913_s1 + $0x28] sm:$0xff]  ;;  %v40_v29 = vshrl.u32 %v39_v23, 7 }
   0x3   :  { %601 = vmatprep.mubr.msk.bf16.mxu1 %vm676_vm0, %v675_v0  ;;  %v77_v7 = vpack.c.bf16 %v63_v5, %v62_v3  ;;  %v134_v10 = vld [vmem:[%s914_s3] sm:$0xff]  ;;  %v66_v11 = vld [vmem:[%s913_s1 + $0x30] sm:$0xff]  ;;  %v78_v12 = vpack.c.bf16 %v65_v9, %v64_v8  ;;  %v67_v13 = vld [vmem:[%s913_s1 + $0x38] sm:$0xff] }
   0x4   :  { %566 = vmatpush3.bf16.msra.mxu0 %v76_v4  ;;  %138 = vperm.xlu0 %649, %v134_v10   ;;  %v135_v14 = vld [vmem:[%s914_s3 + $0x8] sm:$0xff]  ;;  %v651_v15 = vld [vmem:[%s916_s5] sm:$0xff]   ;;  %v79_v17 = vpack.c.bf16 %v67_v13, %v66_v11  ;;  %v655_v20 = vld [vmem:[%s916_s5 + $0x10] sm:$0xff]   ;;  %v41_v34 = vadd.s32 8, %v40_v29 }
   0x5   :  { %567 = vmatprep.subr.bf16.mxu0 %v675_v0  ;;  %586 = vmatpush3.bf16.msra.mxu1 %v651_v15  ;;  %v653_v16 = vld [vmem:[%s916_s5 + $0x8] sm:$0xff]   ;;  %v68_v18 = vld [vmem:[%s913_s1 + $0x40] sm:$0xff]  ;;  %v70_v22 = vld [vmem:[%s913_s1 + $0x50] sm:$0xff] }
   0x6   :  { %587 = vmatprep.subr.bf16.mxu1 %v675_v0  ;;  %v69_v19 = vld [vmem:[%s913_s1 + $0x48] sm:$0xff]  ;;  %v71_v24 = vld [vmem:[%s913_s1 + $0x58] sm:$0xff]  ;;  %v72_v25 = vld [vmem:[%s913_s1 + $0x60] sm:$0xff] }
   0x7   :  { %v80_v21 = vpack.c.bf16 %v69_v19, %v68_v18  ;;  %v657_v26 = vld [vmem:[%s916_s5 + $0x18] sm:$0xff]   ;;  %v81_v27 = vpack.c.bf16 %v71_v24, %v70_v22  ;;  %v73_v28 = vld [vmem:[%s913_s1 + $0x68] sm:$0xff]  ;;  %v659_v30 = vld [vmem:[%s916_s5 + $0x20] sm:$0xff]  }
   0x8   :  { %568 = vmatpush3.bf16.msra.mxu0 %v77_v7  ;;  %143 = vperm.xlu0 %649, %v135_v14   ;;  %v82_v31 = vpack.c.bf16 %v73_v28, %v72_v25  ;;  %v74_v32 = vld [vmem:[%s913_s1 + $0x70] sm:$0xff]  ;;  %v75_v33 = vld [vmem:[%s913_s1 + $0x78] sm:$0xff]  ;;  %v497_v35 = vld [vmem:[%s917_s0] ss:$0 sm:$0xff] }
   0x9   :  { %569 = vmatprep.subr.bf16.mxu0 %v675_v0  ;;  %588 = vmatpush3.bf16.msra.mxu1 %v653_v16  ;;  %v661_v36 = vld [vmem:[%s916_s5 + $0x28] sm:$0xff]   ;;  %v83_v37 = vpack.c.bf16 %v75_v33, %v74_v32  ;;  %vm51_vm1 = vcmp.eq.s32.totalorder %v40_v29, %v497_v35  ;;  %vm52_vm2 = vcmp.eq.s32.totalorder %v41_v34, %v497_v35  ;;  %v650_v38 = vld [vmem:[%s915_s4] sm:$0xff]   ;;  %v654_v41 = vld [vmem:[%s915_s4 + $0x10] sm:$0xff]  }
   0xa   :  { %589 = vmatprep.subr.bf16.mxu1 %v675_v0  ;;  %vm500_vm3 = vmpackc.low %vm52_vm2, %vm51_vm1  ;;  %v652_v40 = vld [vmem:[%s915_s4 + $0x8] sm:$0xff]   ;;  %v656_v42 = vld [vmem:[%s915_s4 + $0x18] sm:$0xff]  }
   0xb   :  { %v658_v43 = vld [vmem:[%s915_s4 + $0x20] sm:$0xff]   ;;  %v660_v44 = vld [vmem:[%s915_s4 + $0x28] sm:$0xff]   ;;  %v662_v45 = vld [vmem:[%s915_s4 + $0x30] sm:$0xff]  }
   0xc   :  { %570 = vmatpush3.bf16.msra.mxu0 %v78_v12  ;;  %v663_v46 = vld [vmem:[%s916_s5 + $0x30] sm:$0xff]   ;;  %v664_v47 = vld [vmem:[%s915_s4 + $0x38] sm:$0xff]   ;;  %v666_v49 = vld [vmem:[%s918_s2] sm:$0xff]  }
   0xd   :  { %571 = vmatprep.subr.bf16.mxu0 %v675_v0  ;;  %590 = vmatpush3.bf16.msra.mxu1 %v655_v20  ;;  %v665_v48 = vld [vmem:[%s916_s5 + $0x38] sm:$0xff]   ;;  %v667_v58 = vld [vmem:[%s919_s7] sm:$0xff]   ;;  %v668_v60 = vld [vmem:[%s919_s7 + $0x8] sm:$0xff]  }
   0xe   :  { %591 = vmatprep.subr.bf16.mxu1 %v675_v0  ;;  %v669_v61 = vld [vmem:[%s919_s7 + $0x10] sm:$0xff]   ;;  %v670_v62 = vld [vmem:[%s919_s7 + $0x18] sm:$0xff]   ;;  %v671_v63 = vld [vmem:[%s919_s7 + $0x20] sm:$0xff]  }
   0xf   :  { %v672_v2 = vld [vmem:[%s919_s7 + $0x28] sm:$0xff]   ;;  %v673_v6 = vld [vmem:[%s919_s7 + $0x30] sm:$0xff]   ;;  %v674_v7 = vld [vmem:[%s919_s7 + $0x38] sm:$0xff]  }
  0x10   :  { %572 = vmatpush3.bf16.msra.mxu0 %v79_v17  ;;  %v519_v9 = vld [vmem:[%s920_s6] ss:$0 sm:$0xff] }
  0x11   :  { %573 = vmatprep.subr.bf16.mxu0 %v675_v0  ;;  %592 = vmatpush3.bf16.msra.mxu1 %v657_v26  ;;  %v520_v19 = vld [vmem:[%s921_s8] ss:$0 sm:$0xff] }
  0x12   :  { %593 = vmatprep.subr.bf16.mxu1 %v675_v0 }
  0x14   :  { %574 = vmatpush3.bf16.msra.mxu0 %v80_v21 }
  0x15   :  { %575 = vmatprep.subr.bf16.mxu0 %v675_v0  ;;  %594 = vmatpush3.bf16.msra.mxu1 %v659_v30 }
  0x16   :  { %595 = vmatprep.subr.bf16.mxu1 %v675_v0 }
  0x18   :  { %576 = vmatpush3.bf16.msra.mxu0 %v81_v27 }
  0x19   :  { %577 = vmatprep.subr.bf16.mxu0 %v675_v0  ;;  %596 = vmatpush3.bf16.msra.mxu1 %v661_v36 }
  0x1a   :  { %597 = vmatprep.subr.bf16.mxu1 %v675_v0 }
  0x1c   :  { %578 = vmatpush3.bf16.msra.mxu0 %v82_v31 }
  0x1d   :  { %579 = vmatprep.subr.bf16.mxu0 %v675_v0  ;;  %598 = vmatpush3.bf16.msra.mxu1 %v663_v46 }
  0x1e   :  { %599 = vmatprep.subr.bf16.mxu1 %v675_v0 }
  0x20   :  { %580 = vmatpush3.bf16.msra.mxu0 %v83_v37 }
  0x21   :  { %605 = vmatprep.subr.bf16.mxu0 %v675_v0  ;;  %600 = vmatpush3.bf16.msra.mxu1 %v665_v48 }
  0x22   :  { %625 = vmatprep.subr.bf16.mxu1 %v675_v0 }
  0x23   :  { %582 = vmatmul.mubr.msk.bf16.vlgmr.msra.gmra.mrb[0].mxu0 %vm500_vm3, %v678_v39 }
  0x24   :  { %606 = vmatpush3.bf16.msra.mxu0 %v650_v38  ;;  %621 = vmatprep.mubr.msk.bf16.mxu0 %vm676_vm0, %v675_v0 }
  0x25   :  { %607 = vmatprep.subr.bf16.mxu0 %v675_v0 }
  0x28   :  { %608 = vmatpush3.bf16.msra.mxu0 %v652_v40 }
  0x29   :  { %609 = vmatprep.subr.bf16.mxu0 %v675_v0 }
  0x2c   :  { %610 = vmatpush3.bf16.msra.mxu0 %v654_v41 }
  0x2d   :  { %611 = vmatprep.subr.bf16.mxu0 %v675_v0 }
  0x30   :  { %612 = vmatpush3.bf16.msra.mxu0 %v656_v42 }
  0x31   :  { %613 = vmatprep.subr.bf16.mxu0 %v675_v0 }
  0x34   :  { %614 = vmatpush3.bf16.msra.mxu0 %v658_v43 }
  0x35   :  { %615 = vmatprep.subr.bf16.mxu0 %v675_v0 }
  0x38   :  { %616 = vmatpush3.bf16.msra.mxu0 %v660_v44 }
  0x39   :  { %617 = vmatprep.subr.bf16.mxu0 %v675_v0 }
  0x3c   :  { %618 = vmatpush3.bf16.msra.mxu0 %v662_v45 }
  0x3d   :  { %619 = vmatprep.subr.bf16.mxu0 %v675_v0 }
  0x40   :  { %620 = vmatpush3.bf16.msra.mxu0 %v664_v47 }
  0x43   :  { %622 = vmatmul.mubr.bf16.vlgmr.msra.gmra.mrb[4].mxu0 %v666_v49 }
  0x83   :  { %v139_v50 = vpop.permute.xlu0 %138 }
  0x87   :  { %v144_v53 = vpop.permute.xlu0 %143 }
  0xf6   :  { %v118_v51 = vpop.f32.mrb[0].mxu0 }
  0xf7   :  { %v583_v52 = vpop.f32.mrb[1].mxu0  ;;  %v146_v55 = vmul.f32 %v139_v50, %v118_v51 }
  0xf8   :  { %v121_v54 = vpop.f32.mrb[2].mxu0 }
  0xf9   :  { %v147_v56 = vmul.f32 %v144_v53, %v121_v54  ;;  %v584_v57 = vpop.f32.mrb[3].mxu0 }
  0xfb   :  { %v166_v59 = vpack.c.bf16 %v147_v56, %v146_v55 }
  0xfd   :  { %602 = vmatmul.mubr.bf16.vlgmr.msra.gmra.mrb[0].mxu1 %v166_v59 }
  0xfe   :  { %626 = vmatpush3.bf16.msra.mxu1 %v667_v58  ;;  %641 = vmatprep.mubr.msk.bf16.mxu1 %vm676_vm0, %v675_v0 }
  0xff   :  { %627 = vmatprep.subr.bf16.mxu1 %v675_v0 }
 0x102   :  { %628 = vmatpush3.bf16.msra.mxu1 %v668_v60 }
 0x103   :  { %629 = vmatprep.subr.bf16.mxu1 %v675_v0 }
 0x106   :  { %630 = vmatpush3.bf16.msra.mxu1 %v669_v61 }
 0x107   :  { %631 = vmatprep.subr.bf16.mxu1 %v675_v0 }
 0x10a   :  { %632 = vmatpush3.bf16.msra.mxu1 %v670_v62 }
 0x10b   :  { %633 = vmatprep.subr.bf16.mxu1 %v675_v0 }
 0x10e   :  { %634 = vmatpush3.bf16.msra.mxu1 %v671_v63 }
 0x10f   :  { %635 = vmatprep.subr.bf16.mxu1 %v675_v0 }
 0x112   :  { %636 = vmatpush3.bf16.msra.mxu1 %v672_v2 }
 0x113   :  { %637 = vmatprep.subr.bf16.mxu1 %v675_v0 }
 0x116   :  { %v360_v1 = vpop.f32.mrb[4].mxu0  ;;  %638 = vmatpush3.bf16.msra.mxu1 %v673_v6 }
 0x117   :  { %v623_v3 = vpop.f32.mrb[5].mxu0  ;;  %639 = vmatprep.subr.bf16.mxu1 %v675_v0 }
 0x118   :  { %v363_v4 = vpop.f32.mrb[6].mxu0 }
 0x119   :  { %v624_v5 = vpop.f32.mrb[7].mxu0 }
 0x11a   :  { %640 = vmatpush3.bf16.msra.mxu1 %v674_v7 }
 0x1d0   :  { %v265_v8 = vpop.f32.mrb[0].mxu1 }
 0x1d1   :  { %v361_v10 = vadd.f32 %v360_v1, %v265_v8  ;;  %v603_v11 = vpop.f32.mrb[1].mxu1 }
 0x1d2   :  { %v268_v12 = vpop.f32.mrb[2].mxu1 }
 0x1d3   :  { %v374_v13 = vadd.f32 %v519_v9, %v361_v10  ;;  %v364_v14 = vadd.f32 %v363_v4, %v268_v12  ;;  %v604_v15 = vpop.f32.mrb[3].mxu1 }
 0x1d5   :  { %v375_v16 = vadd.f32 %v519_v9, %v364_v14  ;;  %v376_v17 = vmax.f32 %v374_v13, 0.0 }
 0x1d7   :  { %v377_v18 = vmax.f32 %v375_v16, 0.0 }
 0x1d9   :  { %v378_v0 = vpack.c.bf16 %v377_v18, %v376_v17 }
 0x1db   :  { %642 = vmatmul.mubr.bf16.vlgmr.msra.gmra.mrb[4].mxu1 %v378_v0 }
 0x2ae   :  { %v484_v20 = vpop.f32.mrb[4].mxu1 }
 0x2af   :  { %v485_v21 = vadd.f32 %v520_v19, %v484_v20  ;;  %v643_v22 = vpop.f32.mrb[5].mxu1 }
 0x2b0   :  { %v487_v23 = vpop.f32.mrb[6].mxu1 }
 0x2b1   :  { %491 = vst [vmem:[%s922_s9] sm:$0xff] %v485_v21  ;;  %v488_v24 = vadd.f32 %v520_v19, %v487_v23  ;;  %v644_v25 = vpop.f32.mrb[7].mxu1 }
 0x2b3   :  { %492 = vst [vmem:[%s922_s9 + $0x8] sm:$0xff] %v488_v24 }

// kernel: meta_layer_forward.2
= control target key start
LH: loop header
LB: loop body
LE: loop exit
PB: predicated region body
PF: predicated region fallthrough
CT: control target
= control target key end

     0   :  { %s1341_s1 = inlined_call_operand.vmem [shape: bf16[384,128], index: 1, kind: input, shape index: {}]   ;;  %s1342_s0 = inlined_call_operand.vmem [shape: bf16[128,384], index: 0, kind: input, shape index: {}]   ;;  %s1343_s3 = inlined_call_operand.vmem [shape: bf16[128,128], index: 3, kind: input, shape index: {}]   ;;  %s1344_s2 = inlined_call_operand.vmem [shape: f32[1,128], index: 2, kind: input, shape index: {}]   ;;  %s1345_s4 = inlined_call_operand.vmem [shape: f32[1,128], index: 4, kind: input, shape index: {}]   ;;  %s1346_s5 = inlined_call_operand.vmem [shape: f32[128,128], index: 5, kind: output, shape index: {}]  }
   0x1   :  { %v1004_v0 = vld [vmem:[%s1341_s1 + $0x40] sm:$0xff]   ;;  %v1006_v2 = vld [vmem:[%s1341_s1 + $0x48] sm:$0xff]   ;;  %v1009_v5 = vld [vmem:[%s1341_s1 + $0x50] sm:$0xff]  }
   0x2   :  { %v1005_v1 = vld [vmem:[%s1341_s1] sm:$0xff]   ;;  %844 = vmatprep.subr.bf16.mxu0 %v1004_v0  ;;  %v1008_v4 = vld [vmem:[%s1341_s1 + $0x8] sm:$0xff]   ;;  %v1011_v7 = vld [vmem:[%s1341_s1 + $0x10] sm:$0xff]  }
   0x3   :  { %845 = vmatpush3.bf16.msra.mxu0 %v1005_v1  ;;  %v1007_v3 = vld [vmem:[%s1341_s1 + $0x80] sm:$0xff]   ;;  %v1010_v6 = vld [vmem:[%s1341_s1 + $0x88] sm:$0xff]   ;;  %v1012_v8 = vld [vmem:[%s1341_s1 + $0x58] sm:$0xff]  }
   0x4   :  { %846 = vmatprep.subr.bf16.mxu0 %v1006_v2  ;;  %940 = vmatprep.subr.bf16.mxu1 %v1007_v3  ;;  %v1013_v9 = vld [vmem:[%s1341_s1 + $0x90] sm:$0xff]   ;;  %v1014_v10 = vld [vmem:[%s1341_s1 + $0x18] sm:$0xff]   ;;  %v1015_v11 = vld [vmem:[%s1341_s1 + $0x60] sm:$0xff]  }
   0x5   :  { %941 = vmatpush3.bf16.msra.mxu1 %v1007_v3  ;;  %v1016_v12 = vld [vmem:[%s1341_s1 + $0x98] sm:$0xff]   ;;  %v1017_v13 = vld [vmem:[%s1341_s1 + $0x20] sm:$0xff]   ;;  %v1018_v15 = vld [vmem:[%s1341_s1 + $0x68] sm:$0xff]  }
   0x6   :  { %942 = vmatprep.subr.bf16.mxu1 %v1010_v6  ;;  %v1019_v14 = vld [vmem:[%s1341_s1 + $0xa0] sm:$0xff]   ;;  %v1020_v16 = vld [vmem:[%s1341_s1 + $0x28] sm:$0xff]   ;;  %v1021_v18 = vld [vmem:[%s1341_s1 + $0x70] sm:$0xff]  }
   0x7   :  { %847 = vmatpush3.bf16.msra.mxu0 %v1008_v4  ;;  %v1022_v17 = vld [vmem:[%s1341_s1 + $0xa8] sm:$0xff]   ;;  %v1023_v19 = vld [vmem:[%s1341_s1 + $0x30] sm:$0xff]   ;;  %v1024_v20 = vld [vmem:[%s1341_s1 + $0x78] sm:$0xff]  }
   0x8   :  { %848 = vmatprep.subr.bf16.mxu0 %v1009_v5  ;;  %v1025_v21 = vld [vmem:[%s1341_s1 + $0xb0] sm:$0xff]   ;;  %v1026_v23 = vld [vmem:[%s1341_s1 + $0x38] sm:$0xff]   ;;  %v1027_v26 = vld [vmem:[%s1342_s0] ss:$12 sps:$4 sm:$0xff]  }
   0x9   :  { %943 = vmatpush3.bf16.msra.mxu1 %v1010_v6  ;;  %v1029_v22 = vld [vmem:[%s1342_s0 + $0x4] ss:$12 sps:$4 sm:$0xff]   ;;  %v1031_v24 = vld [vmem:[%s1342_s0 + $0x8] ss:$12 sps:$4 sm:$0xff]   ;;  %v1030_v25 = vld [vmem:[%s1341_s1 + $0xb8] sm:$0xff]  }
   0xa   :  { %944 = vmatprep.subr.bf16.mxu1 %v1013_v9  ;;  %412 = vmatprep.mubr.bf16.mxu0 %v1029_v22  ;;  %v1033_v27 = vld [vmem:[%s1342_s0 + $0x1c] ss:$12 sps:$4 sm:$0xff]   ;;  %v1032_v28 = vld [vmem:[%s1342_s0 + $0x20] ss:$12 sps:$4 sm:$0xff]   ;;  %v1039_v29 = vld [vmem:[%s1342_s0 + $0x38] ss:$12 sps:$4 sm:$0xff]  }
   0xb   :  { %849 = vmatpush3.bf16.msra.mxu0 %v1011_v7  ;;  %956 = vmatprep.mubr.bf16.mxu1 %v1031_v24  ;;  %v1035_v30 = vld [vmem:[%s1342_s0 + $0x18] ss:$12 sps:$4 sm:$0xff]   ;;  %v1036_v31 = vld [vmem:[%s1342_s0 + $0x34] ss:$12 sps:$4 sm:$0xff]   ;;  %v1040_v32 = vld [vmem:[%s1342_s0 + $0x50] ss:$12 sps:$4 sm:$0xff]  }
   0xc   :  { %850 = vmatprep.subr.bf16.mxu0 %v1012_v8  ;;  %v1047_v33 = vld [vmem:[%s1342_s0 + $0x68] ss:$12 sps:$4 sm:$0xff]   ;;  %v1060_v34 = vld [vmem:[%s1343_s3] sm:$0xff]   ;;  %v1038_v35 = vld [vmem:[%s1342_s0 + $0x30] ss:$12 sps:$4 sm:$0xff]  }
   0xd   :  { %945 = vmatpush3.bf16.msra.mxu1 %v1013_v9  ;;  %v1061_v36 = vld [vmem:[%s1343_s3 + $0x8] sm:$0xff]   ;;  %v1062_v38 = vld [vmem:[%s1343_s3 + $0x10] sm:$0xff]   ;;  %v1055_v40 = vld [vmem:[%s1342_s0 + $0x98] ss:$12 sps:$4 sm:$0xff]  }
   0xe   :  { %946 = vmatprep.subr.bf16.mxu1 %v1016_v12  ;;  %v1041_v37 = vld [vmem:[%s1342_s0 + $0x4c] ss:$12 sps:$4 sm:$0xff]   ;;  %v1043_v41 = vld [vmem:[%s1342_s0 + $0x48] ss:$12 sps:$4 sm:$0xff]   ;;  %v1044_v42 = vld [vmem:[%s1342_s0 + $0x64] ss:$12 sps:$4 sm:$0xff]  }
   0xf   :  { %851 = vmatpush3.bf16.msra.mxu0 %v1014_v10  ;;  %v1048_v39 = vld [vmem:[%s1342_s0 + $0x80] ss:$12 sps:$4 sm:$0xff]   ;;  %v1056_v43 = vld [vmem:[%s1342_s0 + $0xb0] ss:$12 sps:$4 sm:$0xff]   ;;  %v1051_v46 = vld [vmem:[%s1342_s0 + $0x78] ss:$12 sps:$4 sm:$0xff]  }
  0x10   :  { %852 = vmatprep.subr.bf16.mxu0 %v1015_v11  ;;  %v1046_v44 = vld [vmem:[%s1342_s0 + $0x60] ss:$12 sps:$4 sm:$0xff]   ;;  %v1049_v45 = vld [vmem:[%s1342_s0 + $0x7c] ss:$12 sps:$4 sm:$0xff]   ;;  %v1066_v54 = vld [vmem:[%s1343_s3 + $0x30] sm:$0xff]  }
  0x11   :  { %947 = vmatpush3.bf16.msra.mxu1 %v1016_v12  ;;  %v1052_v47 = vld [vmem:[%s1342_s0 + $0x94] ss:$12 sps:$4 sm:$0xff]   ;;  %v1054_v48 = vld [vmem:[%s1342_s0 + $0x90] ss:$12 sps:$4 sm:$0xff]   ;;  %v1057_v49 = vld [vmem:[%s1342_s0 + $0xac] ss:$12 sps:$4 sm:$0xff]  }
  0x12   :  { %948 = vmatprep.subr.bf16.mxu1 %v1019_v14  ;;  %v1059_v50 = vld [vmem:[%s1342_s0 + $0xa8] ss:$12 sps:$4 sm:$0xff]   ;;  %v1063_v51 = vld [vmem:[%s1343_s3 + $0x18] sm:$0xff]   ;;  %v1064_v52 = vld [vmem:[%s1343_s3 + $0x20] sm:$0xff]  }
  0x13   :  { %853 = vmatpush3.bf16.msra.mxu0 %v1017_v13  ;;  %v1065_v53 = vld [vmem:[%s1343_s3 + $0x28] sm:$0xff]   ;;  %v1067_v55 = vld [vmem:[%s1343_s3 + $0x38] sm:$0xff]   ;;  %v1269_v58 = vld [vmem:[%s1344_s2] ss:$0 sm:$0xff] }
  0x14   :  { %854 = vmatprep.subr.bf16.mxu0 %v1018_v15 }
  0x15   :  { %949 = vmatpush3.bf16.msra.mxu1 %v1019_v14 }
  0x16   :  { %950 = vmatprep.subr.bf16.mxu1 %v1022_v17 }
  0x17   :  { %855 = vmatpush3.bf16.msra.mxu0 %v1020_v16 }
  0x18   :  { %856 = vmatprep.subr.bf16.mxu0 %v1021_v18 }
  0x19   :  { %951 = vmatpush3.bf16.msra.mxu1 %v1022_v17 }
  0x1a   :  { %952 = vmatprep.subr.bf16.mxu1 %v1025_v21 }
  0x1b   :  { %857 = vmatpush3.bf16.msra.mxu0 %v1023_v19 }
  0x1c   :  { %858 = vmatprep.subr.bf16.mxu0 %v1024_v20 }
  0x1d   :  { %953 = vmatpush3.bf16.msra.mxu1 %v1025_v21 }
  0x1e   :  { %954 = vmatprep.subr.bf16.mxu1 %v1030_v25 }
  0x1f   :  { %859 = vmatpush3.bf16.msra.mxu0 %v1026_v23 }
  0x21   :  { %955 = vmatpush3.bf16.msra.mxu1 %v1030_v25 }
  0x22   :  { %413 = vmatmul.mubr.bf16.vlgmr.msra.gmra.mrb[0].mxu0 %v1027_v26  ;;  %972 = vmatprep.subr.bf16.mxu1 %v1060_v34 }
  0x23   :  { %420 = vmatprep.mubr.bf16.mxu0 %v1033_v27 }
  0x24   :  { %957 = vmatmul.mubr.bf16.vlgmr.msra.gmra.mrb[0].mxu1 %v1032_v28 }
  0x25   :  { %960 = vmatprep.mubr.bf16.mxu1 %v1039_v29  ;;  %973 = vmatpush3.bf16.msra.mxu1 %v1060_v34 }
  0x26   :  { %974 = vmatprep.subr.bf16.mxu1 %v1061_v36 }
  0x29   :  { %975 = vmatpush3.bf16.msra.mxu1 %v1061_v36 }
  0x2a   :  { %421 = vmatmul.mubr.bf16.gmra.mrb[4].mxu0 %v1035_v30  ;;  %976 = vmatprep.subr.bf16.mxu1 %v1062_v38 }
  0x2b   :  { %428 = vmatprep.mubr.bf16.mxu0 %v1036_v31 }
  0x2c   :  { %961 = vmatmul.mubr.bf16.gmra.mrb[4].mxu1 %v1040_v32 }
  0x2d   :  { %964 = vmatprep.mubr.bf16.mxu1 %v1047_v33  ;;  %977 = vmatpush3.bf16.msra.mxu1 %v1062_v38 }
  0x2e   :  { %978 = vmatprep.subr.bf16.mxu1 %v1063_v51 }
  0x31   :  { %979 = vmatpush3.bf16.msra.mxu1 %v1063_v51 }
  0x32   :  { %429 = vmatmul.mubr.bf16.gmra.mrb[8].mxu0 %v1038_v35  ;;  %980 = vmatprep.subr.bf16.mxu1 %v1064_v52 }
  0x33   :  { %436 = vmatprep.mubr.bf16.mxu0 %v1041_v37 }
  0x34   :  { %965 = vmatmul.mubr.bf16.gmra.mrb[8].mxu1 %v1048_v39 }
  0x35   :  { %968 = vmatprep.mubr.bf16.mxu1 %v1055_v40  ;;  %981 = vmatpush3.bf16.msra.mxu1 %v1064_v52 }
  0x36   :  { %982 = vmatprep.subr.bf16.mxu1 %v1065_v53 }
  0x39   :  { %983 = vmatpush3.bf16.msra.mxu1 %v1065_v53 }
  0x3a   :  { %437 = vmatmul.mubr.bf16.gmra.mrb[12].mxu0 %v1043_v41  ;;  %984 = vmatprep.subr.bf16.mxu1 %v1066_v54 }
  0x3b   :  { %444 = vmatprep.mubr.bf16.mxu0 %v1044_v42 }
  0x3c   :  { %969 = vmatmul.mubr.bf16.gmra.mrb[12].mxu1 %v1056_v43 }
  0x3d   :  { %985 = vmatpush3.bf16.msra.mxu1 %v1066_v54 }
  0x3e   :  { %986 = vmatprep.subr.bf16.mxu1 %v1067_v55 }
  0x41   :  { %987 = vmatpush3.bf16.msra.mxu1 %v1067_v55 }
  0x42   :  { %445 = vmatmul.mubr.bf16.gmra.mrb[16].mxu0 %v1046_v44 }
  0x43   :  { %452 = vmatprep.mubr.bf16.mxu0 %v1049_v45 }
  0x4a   :  { %453 = vmatmul.mubr.bf16.gmra.mrb[20].mxu0 %v1051_v46 }
  0x4b   :  { %460 = vmatprep.mubr.bf16.mxu0 %v1052_v47 }
  0x52   :  { %461 = vmatmul.mubr.bf16.gmra.mrb[24].mxu0 %v1054_v48 }
  0x53   :  { %468 = vmatprep.mubr.bf16.mxu0 %v1057_v49 }
  0x5a   :  { %469 = vmatmul.mubr.bf16.gmra.mrb[28].mxu0 %v1059_v50 }
  0xf5   :  { %v860_v56 = vpop.f32.mrb[0].mxu0 }
  0xf6   :  { %v861_v57 = vpop.f32.mrb[1].mxu0 }
  0xf7   :  { %v862_v59 = vadd.f32 %v861_v57, %v860_v56  ;;  %v863_v60 = vpop.f32.mrb[2].mxu0  ;;  %v958_v62 = vpop.f32.mrb[0].mxu1 }
  0xf8   :  { %v864_v61 = vpop.f32.mrb[3].mxu0  ;;  %v511_v1 = vpop.f32.mrb[1].mxu1 }
  0xf9   :  { %v865_v63 = vadd.f32 %v864_v61, %v863_v60  ;;  %v415_v0 = vadd.f32 %v862_v59, %v1269_v58  ;;  %v959_v2 = vpop.f32.mrb[2].mxu1 }
  0xfa   :  { %v514_v5 = vpop.f32.mrb[3].mxu1 }
  0xfb   :  { %v512_v3 = vadd.f32 %v511_v1, %v415_v0  ;;  %v418_v4 = vadd.f32 %v865_v63, %v1269_v58 }
  0xfd   :  { %v515_v6 = vadd.f32 %v514_v5, %v418_v4  ;;  %v866_v7 = vpop.f32.mrb[4].mxu0  ;;  %v574_v9 = vmax.f32 %v512_v3, 0.0 }
  0xfe   :  { %v867_v8 = vpop.f32.mrb[5].mxu0 }
  0xff   :  { %v575_v10 = vmax.f32 %v515_v6, 0.0  ;;  %v868_v11 = vadd.f32 %v867_v8, %v866_v7  ;;  %v869_v12 = vpop.f32.mrb[6].mxu0  ;;  %v962_v14 = vpop.f32.mrb[4].mxu1 }
 0x100   :  { %v870_v13 = vpop.f32.mrb[7].mxu0  ;;  %v527_v18 = vpop.f32.mrb[5].mxu1 }
 0x101   :  { %v590_v15 = vpack.c.bf16 %v575_v10, %v574_v9  ;;  %v423_v16 = vadd.f32 %v868_v11, %v1269_v58  ;;  %v871_v17 = vadd.f32 %v870_v13, %v869_v12  ;;  %v963_v19 = vpop.f32.mrb[6].mxu1 }
 0x102   :  { %v530_v22 = vpop.f32.mrb[7].mxu1 }
 0x103   :  { %v520_v20 = vadd.f32 %v958_v62, %v423_v16  ;;  %v426_v21 = vadd.f32 %v871_v17, %v1269_v58  ;;  %988 = vmatprep.mubr.bf16.mxu1 %v590_v15 }
 0x105   :  { %v523_v23 = vadd.f32 %v959_v2, %v426_v21  ;;  %v872_v24 = vpop.f32.mrb[8].mxu0  ;;  %v576_v26 = vmax.f32 %v520_v20, 0.0 }
 0x106   :  { %v873_v25 = vpop.f32.mrb[9].mxu0 }
 0x107   :  { %v577_v27 = vmax.f32 %v523_v23, 0.0  ;;  %v874_v28 = vadd.f32 %v873_v25, %v872_v24  ;;  %v875_v29 = vpop.f32.mrb[10].mxu0  ;;  %v966_v31 = vpop.f32.mrb[8].mxu1 }
 0x108   :  { %v876_v30 = vpop.f32.mrb[11].mxu0  ;;  %v543_v35 = vpop.f32.mrb[9].mxu1 }
 0x109   :  { %v591_v32 = vpack.c.bf16 %v577_v27, %v576_v26  ;;  %v877_v33 = vadd.f32 %v876_v30, %v875_v29  ;;  %v431_v34 = vadd.f32 %v874_v28, %v1269_v58  ;;  %v967_v36 = vpop.f32.mrb[10].mxu1 }
 0x10a   :  { %v546_v39 = vpop.f32.mrb[11].mxu1 }
 0x10b   :  { %v528_v37 = vadd.f32 %v527_v18, %v431_v34  ;;  %989 = vmatmul.mubr.bf16.vlgmr.msra.gmra.mrb[16].mxu1 %v591_v32  ;;  %v434_v38 = vadd.f32 %v877_v33, %v1269_v58 }
 0x10d   :  { %v531_v40 = vadd.f32 %v530_v22, %v434_v38  ;;  %v878_v41 = vpop.f32.mrb[12].mxu0  ;;  %v578_v43 = vmax.f32 %v528_v37, 0.0 }
 0x10e   :  { %v879_v42 = vpop.f32.mrb[13].mxu0 }
 0x10f   :  { %v579_v44 = vmax.f32 %v531_v40, 0.0  ;;  %v880_v45 = vadd.f32 %v879_v42, %v878_v41  ;;  %v881_v46 = vpop.f32.mrb[14].mxu0  ;;  %v1277_v48 = vpop.f32.mrb[12].mxu1 }
 0x110   :  { %v882_v47 = vpop.f32.mrb[15].mxu0  ;;  %v559_v52 = vpop.f32.mrb[13].mxu1 }
 0x111   :  { %v592_v49 = vpack.c.bf16 %v579_v44, %v578_v43  ;;  %v439_v50 = vadd.f32 %v880_v45, %v1269_v58  ;;  %v883_v51 = vadd.f32 %v882_v47, %v881_v46  ;;  %v971_v53 = vpop.f32.mrb[14].mxu1 }
 0x112   :  { %v562_v56 = vpop.f32.mrb[15].mxu1 }
 0x113   :  { %v536_v54 = vadd.f32 %v962_v14, %v439_v50  ;;  %v442_v55 = vadd.f32 %v883_v51, %v1269_v58  ;;  %992 = vmatprep.mubr.bf16.mxu1 %v592_v49  ;;  %v835_v51 = vld [vmem:[%s1345_s4] ss:$0 sm:$0xff] }
 0x115   :  { %v539_v57 = vadd.f32 %v963_v19, %v442_v55  ;;  %v884_v59 = vpop.f32.mrb[16].mxu0  ;;  %v580_v61 = vmax.f32 %v536_v54, 0.0 }
 0x116   :  { %v885_v60 = vpop.f32.mrb[17].mxu0 }
 0x117   :  { %v581_v62 = vmax.f32 %v539_v57, 0.0  ;;  %v886_v63 = vadd.f32 %v885_v60, %v884_v59  ;;  %v887_v0 = vpop.f32.mrb[18].mxu0 }
 0x118   :  { %v888_v1 = vpop.f32.mrb[19].mxu0 }
 0x119   :  { %v889_v2 = vadd.f32 %v888_v1, %v887_v0  ;;  %v447_v3 = vadd.f32 %v886_v63, %v1269_v58  ;;  %v593_v4 = vpack.c.bf16 %v581_v62, %v580_v61 }
 0x11b   :  { %v544_v5 = vadd.f32 %v543_v35, %v447_v3  ;;  %993 = vmatmul.mubr.bf16.gmra.mrb[20].mxu1 %v593_v4  ;;  %v450_v6 = vadd.f32 %v889_v2, %v1269_v58 }
 0x11d   :  { %v547_v7 = vadd.f32 %v546_v39, %v450_v6  ;;  %v890_v8 = vpop.f32.mrb[20].mxu0  ;;  %v582_v10 = vmax.f32 %v544_v5, 0.0 }
 0x11e   :  { %v891_v9 = vpop.f32.mrb[21].mxu0 }
 0x11f   :  { %v583_v11 = vmax.f32 %v547_v7, 0.0  ;;  %v892_v12 = vadd.f32 %v891_v9, %v890_v8  ;;  %v893_v13 = vpop.f32.mrb[22].mxu0 }
 0x120   :  { %v894_v14 = vpop.f32.mrb[23].mxu0 }
 0x121   :  { %v594_v15 = vpack.c.bf16 %v583_v11, %v582_v10  ;;  %v455_v16 = vadd.f32 %v892_v12, %v1269_v58  ;;  %v895_v17 = vadd.f32 %v894_v14, %v893_v13 }
 0x123   :  { %v552_v18 = vadd.f32 %v966_v31, %v455_v16  ;;  %v458_v19 = vadd.f32 %v895_v17, %v1269_v58  ;;  %996 = vmatprep.mubr.bf16.mxu1 %v594_v15 }
 0x125   :  { %v555_v20 = vadd.f32 %v967_v36, %v458_v19  ;;  %v896_v21 = vpop.f32.mrb[24].mxu0  ;;  %v584_v23 = vmax.f32 %v552_v18, 0.0 }
 0x126   :  { %v897_v22 = vpop.f32.mrb[25].mxu0 }
 0x127   :  { %v585_v24 = vmax.f32 %v555_v20, 0.0  ;;  %v898_v25 = vadd.f32 %v897_v22, %v896_v21  ;;  %v899_v26 = vpop.f32.mrb[26].mxu0 }
 0x128   :  { %v900_v27 = vpop.f32.mrb[27].mxu0 }
 0x129   :  { %v901_v28 = vadd.f32 %v900_v27, %v899_v26  ;;  %v463_v29 = vadd.f32 %v898_v25, %v1269_v58  ;;  %v595_v30 = vpack.c.bf16 %v585_v24, %v584_v23 }
 0x12b   :  { %v560_v32 = vadd.f32 %v559_v52, %v463_v29  ;;  %997 = vmatmul.mubr.bf16.gmra.mrb[24].mxu1 %v595_v30  ;;  %v466_v33 = vadd.f32 %v901_v28, %v1269_v58 }
 0x12d   :  { %v563_v31 = vadd.f32 %v562_v56, %v466_v33  ;;  %v902_v34 = vpop.f32.mrb[28].mxu0  ;;  %v586_v37 = vmax.f32 %v560_v32, 0.0 }
 0x12e   :  { %v903_v35 = vpop.f32.mrb[29].mxu0 }
 0x12f   :  { %v587_v36 = vmax.f32 %v563_v31, 0.0  ;;  %v904_v38 = vadd.f32 %v903_v35, %v902_v34  ;;  %v905_v39 = vpop.f32.mrb[30].mxu0 }
 0x130   :  { %v906_v40 = vpop.f32.mrb[31].mxu0 }
 0x131   :  { %v596_v41 = vpack.c.bf16 %v587_v36, %v586_v37  ;;  %v471_v42 = vadd.f32 %v904_v38, %v1269_v58  ;;  %v907_v43 = vadd.f32 %v906_v40, %v905_v39 }
 0x133   :  { %v568_v44 = vadd.f32 %v1277_v48, %v471_v42  ;;  %v474_v45 = vadd.f32 %v907_v43, %v1269_v58  ;;  %1000 = vmatprep.mubr.bf16.mxu1 %v596_v41 }
 0x135   :  { %v571_v46 = vadd.f32 %v971_v53, %v474_v45  ;;  %v588_v47 = vmax.f32 %v568_v44, 0.0 }
 0x137   :  { %v589_v49 = vmax.f32 %v571_v46, 0.0 }
 0x139   :  { %v597_v50 = vpack.c.bf16 %v589_v49, %v588_v47 }
 0x13b   :  { %1001 = vmatmul.mubr.bf16.gmra.mrb[28].mxu1 %v597_v50 }
 0x1de   :  { %v990_v52 = vpop.f32.mrb[16].mxu1 }
 0x1df   :  { %v712_v54 = vadd.f32 %v990_v52, %v835_v51  ;;  %v703_v55 = vpop.f32.mrb[17].mxu1 }
 0x1e0   :  { %v704_v56 = vadd.f32 %v835_v51, %v703_v55  ;;  %v991_v57 = vpop.f32.mrb[18].mxu1 }
 0x1e1   :  { %768 = vst [vmem:[%s1346_s5 + $0x10] sm:$0xff] %v712_v54  ;;  %v715_v58 = vadd.f32 %v991_v57, %v835_v51  ;;  %v706_v48 = vpop.f32.mrb[19].mxu1 }
 0x1e2   :  { %766 = vst [vmem:[%s1346_s5] sm:$0xff] %v704_v56  ;;  %v707_v53 = vadd.f32 %v835_v51, %v706_v48 }
 0x1e3   :  { %769 = vst [vmem:[%s1346_s5 + $0x18] sm:$0xff] %v715_v58 }
 0x1e4   :  { %767 = vst [vmem:[%s1346_s5 + $0x8] sm:$0xff] %v707_v53 }
 0x1ee   :  { %v994_v59 = vpop.f32.mrb[20].mxu1 }
 0x1ef   :  { %v728_v60 = vadd.f32 %v994_v59, %v835_v51  ;;  %v719_v61 = vpop.f32.mrb[21].mxu1 }
 0x1f0   :  { %v720_v62 = vadd.f32 %v835_v51, %v719_v61  ;;  %v995_v63 = vpop.f32.mrb[22].mxu1 }
 0x1f1   :  { %772 = vst [vmem:[%s1346_s5 + $0x30] sm:$0xff] %v728_v60  ;;  %v731_v0 = vadd.f32 %v995_v63, %v835_v51  ;;  %v722_v1 = vpop.f32.mrb[23].mxu1 }
 0x1f2   :  { %770 = vst [vmem:[%s1346_s5 + $0x20] sm:$0xff] %v720_v62  ;;  %v723_v2 = vadd.f32 %v835_v51, %v722_v1 }
 0x1f3   :  { %773 = vst [vmem:[%s1346_s5 + $0x38] sm:$0xff] %v731_v0 }
 0x1f4   :  { %771 = vst [vmem:[%s1346_s5 + $0x28] sm:$0xff] %v723_v2 }
 0x1fe   :  { %v998_v3 = vpop.f32.mrb[24].mxu1 }
 0x1ff   :  { %v744_v4 = vadd.f32 %v998_v3, %v835_v51  ;;  %v735_v5 = vpop.f32.mrb[25].mxu1 }
 0x200   :  { %v736_v6 = vadd.f32 %v835_v51, %v735_v5  ;;  %v999_v7 = vpop.f32.mrb[26].mxu1 }
 0x201   :  { %776 = vst [vmem:[%s1346_s5 + $0x50] sm:$0xff] %v744_v4  ;;  %v747_v8 = vadd.f32 %v999_v7, %v835_v51  ;;  %v738_v9 = vpop.f32.mrb[27].mxu1 }
 0x202   :  { %774 = vst [vmem:[%s1346_s5 + $0x40] sm:$0xff] %v736_v6  ;;  %v739_v10 = vadd.f32 %v835_v51, %v738_v9 }
 0x203   :  { %777 = vst [vmem:[%s1346_s5 + $0x58] sm:$0xff] %v747_v8 }
 0x204   :  { %775 = vst [vmem:[%s1346_s5 + $0x48] sm:$0xff] %v739_v10 }
 0x20e   :  { %v1002_v11 = vpop.f32.mrb[28].mxu1 }
 0x20f   :  { %v760_v12 = vadd.f32 %v1002_v11, %v835_v51  ;;  %v751_v13 = vpop.f32.mrb[29].mxu1 }
 0x210   :  { %v752_v14 = vadd.f32 %v835_v51, %v751_v13  ;;  %v1003_v15 = vpop.f32.mrb[30].mxu1 }
 0x211   :  { %780 = vst [vmem:[%s1346_s5 + $0x70] sm:$0xff] %v760_v12  ;;  %v763_v16 = vadd.f32 %v1003_v15, %v835_v51  ;;  %v754_v17 = vpop.f32.mrb[31].mxu1 }
 0x212   :  { %778 = vst [vmem:[%s1346_s5 + $0x60] sm:$0xff] %v752_v14  ;;  %v755_v18 = vadd.f32 %v835_v51, %v754_v17 }
 0x213   :  { %781 = vst [vmem:[%s1346_s5 + $0x78] sm:$0xff] %v763_v16 }
 0x214   :  { %779 = vst [vmem:[%s1346_s5 + $0x68] sm:$0xff] %v755_v18 }

</bundles_post_ra>
